<compile_context>
chip_gen: v5e
topology: v5e:2x2
jax: 0.10.0
libtpu: 0.0.40
codegen_flags: <defaults>
</compile_context>

<pallas_src>
import functools

import numpy as np
import jax
import jax.numpy as jnp
from jax.experimental import pallas as pl
from jax.experimental.pallas import tpu as pltpu


def _round_up(x, m):
    return (x + m - 1) // m * m


def _choose_tile(out_len, max_tile=1024):
    """Spatial tile (lanes): multiple of 128, preferably dividing the padded length."""
    out128 = _round_up(out_len, 128)
    n128 = out128 // 128
    best = 128
    for f in range(1, min(n128, max_tile // 128) + 1):
        if n128 % f == 0:
            best = f * 128
    if best < 256 and out128 > max_tile:
        best = max_tile          # accept a ragged (zero-padded) last tile
    return best


def _upconv_kernel(x_ref, w_ref, b_ref, o_ref, *, taps, tile_l):
    # x_ref: (1, Cin_pad, in_tile)       halo'd input tile (bf16/f32)
    # w_ref: (KH*KW, Cout_pad, Cin_pad)  per-tap weight slabs (resident)
    # b_ref: (Cout_pad, 1)               f32 bias
    # o_ref: (1, Cout_pad, tile_l)       lane-dense output tile (128-multiple)
    acc = jnp.zeros((o_ref.shape[1], tile_l), jnp.float32)
    for i, off in enumerate(taps):          # static offsets kh*Wp + kw
        acc = acc + jnp.dot(w_ref[i], x_ref[0, :, off:off + tile_l],
                            preferred_element_type=jnp.float32)
    o_ref[0] = (acc + b_ref[...]).astype(o_ref.dtype)


def conv2d_taps_pallas(x_tiles, w_taps, bias, *, taps, tile_l, out_len_pad):
    """Dense stride-1 valid conv over pre-gathered, halo'd spatial tiles."""
    n, cin_pad, total_in = x_tiles.shape
    k2, cout_pad, _ = w_taps.shape
    n_tiles = out_len_pad // tile_l
    in_tile = total_in // n_tiles

    kernel = functools.partial(_upconv_kernel, taps=tuple(taps), tile_l=tile_l)

    # Generous VMEM estimate: double-buffered input/output tiles + resident weights.
    est = (2 * cin_pad * in_tile * x_tiles.dtype.itemsize
           + 2 * cout_pad * tile_l * 4
           + k2 * cout_pad * 128 * w_taps.dtype.itemsize
           + cout_pad * 128 * 4)
    vmem_limit = int(min(64 * 1024 * 1024, max(8 * 1024 * 1024, 4 * est)))

    return pl.pallas_call(
        kernel,
        out_shape=jax.ShapeDtypeStruct((n, cout_pad, out_len_pad), jnp.float32),
        grid_spec=pltpu.PrefetchScalarGridSpec(
            num_scalar_prefetch=0,
            grid=(n, n_tiles),
            in_specs=[
                pl.BlockSpec((1, cin_pad, in_tile), lambda b, t: (b, 0, t)),
                pl.BlockSpec((k2, cout_pad, cin_pad), lambda b, t: (0, 0, 0)),
                pl.BlockSpec((cout_pad, 1), lambda b, t: (0, 0)),
            ],
            out_specs=pl.BlockSpec((1, cout_pad, tile_l), lambda b, t: (b, 0, t)),
        ),
        compiler_params=pltpu.CompilerParams(
            dimension_semantics=("parallel", "arbitrary"),
            vmem_limit_bytes=vmem_limit),
    )(x_tiles, w_taps, bias)


class UpsampleNewConvPallas:
    """JAX/Pallas equivalent of the PyTorch UpsampleNewConv module."""

    def __init__(self, in_channels, out_channels, kernel_size, stride,
                 upsample=None, key=None, compute_dtype=jnp.bfloat16):
        self.upsample = upsample
        self.in_channels = int(in_channels)
        self.out_channels = int(out_channels)
        self.kernel_size = int(kernel_size)
        self.stride = (stride, stride) if isinstance(stride, int) else tuple(stride)
        self.n_pad = self.kernel_size // 2          # floor(kernel_size / 2)
        self.compute_dtype = compute_dtype
        self.cin_pad = _round_up(self.in_channels, 8)
        self.cout_pad = _round_up(self.out_channels, 8)

        if key is None:
            key = jax.random.PRNGKey(0)
        kw_key, kb_key = jax.random.split(key)
        # PyTorch Conv2d default init: U(-bound, bound), bound = 1/sqrt(fan_in)
        fan_in = in_channels * kernel_size * kernel_size
        bound = 1.0 / float(np.sqrt(fan_in))
        self.w_oihw = jax.random.uniform(
            kw_key, (out_channels, in_channels, kernel_size, kernel_size),
            dtype=jnp.float32, minval=-bound, maxval=bound)
        self.bias = jax.random.uniform(
            kb_key, (out_channels,), dtype=jnp.float32, minval=-bound, maxval=bound)

        # Per-tap weight slabs: (KH*KW, Cout_pad, Cin_pad); tap index = kh*KW + kw.
        w = jnp.transpose(self.w_oihw, (2, 3, 0, 1))            # (KH, KW, Cout, Cin)
        w = jnp.pad(w, ((0, 0), (0, 0),
                        (0, self.cout_pad - out_channels),
                        (0, self.cin_pad - in_channels)))
        self.w_taps = w.reshape(kernel_size * kernel_size,
                                self.cout_pad, self.cin_pad).astype(compute_dtype)
        self.bias_pad = jnp.pad(
            self.bias, (0, self.cout_pad - out_channels)
        ).reshape(self.cout_pad, 1).astype(jnp.float32)

    @staticmethod
    def _upsample_reflect_indices(n, scale, pad):
        # nearest upsample by `scale` then ReflectionPad2d by `pad`, as one index map
        m = n * scale
        up = np.arange(m) // scale                   # nearest: src = i // scale
        j = np.arange(m + 2 * pad) - pad
        j = np.where(j < 0, -j, j)                   # reflect (no edge repeat)
        j = np.where(j >= m, 2 * m - 2 - j, j)
        return up[j].astype(np.int32)

    def __call__(self, x_nchw):
        n, c, h, w = x_nchw.shape
        assert c == self.in_channels
        s = int(self.upsample) if self.upsample else 1
        p, k = self.n_pad, self.kernel_size
        sh, sw = self.stride
        assert p < h * s and p < w * s, "reflection pad exceeds upsampled extent"

        hp, wp = h * s + 2 * p, w * s + 2 * p
        hd = hp - k + 1                     # dense (stride-1) output rows
        out_len = hd * wp                   # dense flattened output length
        max_tap = (k - 1) * wp + (k - 1)    # largest static tap offset (halo)

        # Tile so the f32 accumulator stays comfortably in vregs.
        max_tile = int(min(1024, max(256, _round_up(16384 // self.cout_pad, 128))))
        tile_l = _choose_tile(out_len, max_tile=max_tile)
        out_len_pad = _round_up(out_len, tile_l)
        n_tiles = out_len_pad // tile_l
        in_tile = _round_up(tile_l + max_tap, 128)

        # Upsample + reflection pad + channel pad + zero tail + halo'd tiling folded
        # into ONE gather over a small zero-extended source (single big HBM write).
        row_map = self._upsample_reflect_indices(h, s, p)
        col_map = self._upsample_reflect_indices(w, s, p)
        img_map = (row_map[:, None] * w + col_map[None, :]).reshape(-1)   # (hp*wp,)
        zero_col = h * w
        g = (np.arange(n_tiles)[:, None] * tile_l
             + np.arange(in_tile)[None, :])                               # global pos
        idx = np.where(g < hp * wp, img_map[np.minimum(g, hp * wp - 1)], zero_col)
        idx = jnp.asarray(idx.reshape(-1).astype(np.int32))

        x_src = x_nchw.reshape(n, c, h * w).astype(self.compute_dtype)
        x_src = jnp.pad(x_src, ((0, 0), (0, self.cin_pad - c), (0, 1)))   # + zero col
        x_tiles = jnp.take(x_src, idx, axis=2)        # (n, cin_pad, n_tiles*in_tile)

        taps = tuple(kh * wp + kw for kh in range(k) for kw in range(k))
        dense = conv2d_taps_pallas(x_tiles, self.w_taps, self.bias_pad,
                                   taps=taps, tile_l=tile_l,
                                   out_len_pad=out_len_pad)

        # Dense stride-1 result lives on a (Hd, Wp) grid; trailing padded lanes and
        # columns >= Wp-K+1 are wrap-around garbage -> crop, then strided decimation.
        dense = dense[:, :self.out_channels, :out_len].reshape(
            n, self.out_channels, hd, wp)
        ho = (hp - k) // sh + 1
        wo = (wp - k) // sw + 1
        return dense[:, :, ::sh, ::sw][:, :, :ho, :wo]


if __name__ == "__main__":
    key = jax.random.PRNGKey(0)
    x_key, p_key = jax.random.split(key)

    # small shapes: batch=2, in_channels=4, spatial=16x16
    x = jax.random.normal(x_key, (2, 4, 16, 16), dtype=jnp.float32)

    module = UpsampleNewConvPallas(
        in_channels=4, out_channels=8, kernel_size=3, stride=1,
        upsample=2, key=p_key)

    out = jax.block_until_ready(module(x))

    # reference: nearest upsample + reflect pad + lax conv (NCHW), with the same
    # bf16 operand rounding as the kernel (f32 accumulation on both sides).
    cd = module.compute_dtype
    x_up = jnp.repeat(jnp.repeat(x, 2, axis=2), 2, axis=3)
    x_pad = jnp.pad(x_up, ((0, 0), (0, 0), (1, 1), (1, 1)),
                    mode="reflect").astype(cd)
    ref = jax.lax.conv_general_dilated(
        x_pad, module.w_oihw.astype(cd), window_strides=(1, 1), padding="VALID",
        dimension_numbers=("NCHW", "OIHW", "NCHW"),
        preferred_element_type=jnp.float32,
    ) + module.bias[None, :, None, None]

    assert out.shape == (2, 8, 32, 32), out.shape
    err = float(jnp.max(jnp.abs(out - ref)))
    assert err < 1e-3, err
    print("KERNEL_OK")
</pallas_src>

<mosaic_0001>
module attributes {stable_mosaic.version = 11 : i64} {
  func.func @_upconv_kernel(%arg0: i32, %arg1: i32, %arg2: memref<1x8x512xbf16, #tpu.memory_space<vmem>>, %arg3: memref<9x8x8xbf16, #tpu.memory_space<vmem>>, %arg4: memref<8x1xf32, #tpu.memory_space<vmem>>, %arg5: memref<1x8x384xf32, #tpu.memory_space<vmem>>) attributes {dimension_semantics = [#tpu.dimension_semantics<parallel>, #tpu.dimension_semantics<arbitrary>], iteration_bounds = array<i64: 2, 3>, scalar_prefetch = 0 : i64, scratch_operands = 0 : i64, tpu.core_type = #tpu.core_type<tc>, window_params = [{transform_indices = @transform_0, window_bounds = array<i64: 1, 8, 512>}, {pipeline_mode = #tpu.pipeline_mode<synchronous>, transform_indices = @transform_1, window_bounds = array<i64: 9, 8, 8>}, {pipeline_mode = #tpu.pipeline_mode<synchronous>, transform_indices = @transform_2, window_bounds = array<i64: 8, 1>}, {transform_indices = @transform_3, window_bounds = array<i64: 1, 8, 384>}]} {
    %cst = arith.constant 0.000000e+00 : f32
    %0 = vector.broadcast %cst : f32 to vector<8x384xf32>
    %c0 = arith.constant 0 : index
    %c0_0 = arith.constant 0 : index
    %c0_1 = arith.constant 0 : index
    %1 = vector.load %arg3[%c0, %c0_0, %c0_1] : memref<9x8x8xbf16, #tpu.memory_space<vmem>>, vector<1x8x8xbf16>
    %2 = vector.shape_cast %1 : vector<1x8x8xbf16> to vector<8x8xbf16>
    %c0_2 = arith.constant 0 : index
    %c0_3 = arith.constant 0 : index
    %c0_4 = arith.constant 0 : index
    %3 = vector.load %arg2[%c0_2, %c0_3, %c0_4] : memref<1x8x512xbf16, #tpu.memory_space<vmem>>, vector<1x8x384xbf16>
    %4 = vector.shape_cast %3 : vector<1x8x384xbf16> to vector<8x384xbf16>
    %cst_5 = arith.constant dense<0.000000e+00> : vector<8x384xf32>
    %5 = tpu.matmul %2, %4, %cst_5 {dimension_numbers = #tpu.dot_dimension_numbers<[1], [0], [0], [1], [0, 0, 1, 1], [], []>} : vector<8x8xbf16>, vector<8x384xbf16>, vector<8x384xf32> -> vector<8x384xf32>
    %6 = arith.addf %0, %5 : vector<8x384xf32>
    %c1 = arith.constant 1 : index
    %c0_6 = arith.constant 0 : index
    %c0_7 = arith.constant 0 : index
    %7 = vector.load %arg3[%c1, %c0_6, %c0_7] : memref<9x8x8xbf16, #tpu.memory_space<vmem>>, vector<1x8x8xbf16>
    %8 = vector.shape_cast %7 : vector<1x8x8xbf16> to vector<8x8xbf16>
    %c0_8 = arith.constant 0 : index
    %c0_9 = arith.constant 0 : index
    %c1_10 = arith.constant 1 : index
    %9 = vector.load %arg2[%c0_8, %c0_9, %c1_10] : memref<1x8x512xbf16, #tpu.memory_space<vmem>>, vector<1x8x384xbf16>
    %10 = vector.shape_cast %9 : vector<1x8x384xbf16> to vector<8x384xbf16>
    %cst_11 = arith.constant dense<0.000000e+00> : vector<8x384xf32>
    %11 = tpu.matmul %8, %10, %cst_11 {dimension_numbers = #tpu.dot_dimension_numbers<[1], [0], [0], [1], [0, 0, 1, 1], [], []>} : vector<8x8xbf16>, vector<8x384xbf16>, vector<8x384xf32> -> vector<8x384xf32>
    %12 = arith.addf %6, %11 : vector<8x384xf32>
    %c2 = arith.constant 2 : index
    %c0_12 = arith.constant 0 : index
    %c0_13 = arith.constant 0 : index
    %13 = vector.load %arg3[%c2, %c0_12, %c0_13] : memref<9x8x8xbf16, #tpu.memory_space<vmem>>, vector<1x8x8xbf16>
    %14 = vector.shape_cast %13 : vector<1x8x8xbf16> to vector<8x8xbf16>
    %c0_14 = arith.constant 0 : index
    %c0_15 = arith.constant 0 : index
    %c2_16 = arith.constant 2 : index
    %15 = vector.load %arg2[%c0_14, %c0_15, %c2_16] : memref<1x8x512xbf16, #tpu.memory_space<vmem>>, vector<1x8x384xbf16>
    %16 = vector.shape_cast %15 : vector<1x8x384xbf16> to vector<8x384xbf16>
    %cst_17 = arith.constant dense<0.000000e+00> : vector<8x384xf32>
    %17 = tpu.matmul %14, %16, %cst_17 {dimension_numbers = #tpu.dot_dimension_numbers<[1], [0], [0], [1], [0, 0, 1, 1], [], []>} : vector<8x8xbf16>, vector<8x384xbf16>, vector<8x384xf32> -> vector<8x384xf32>
    %18 = arith.addf %12, %17 : vector<8x384xf32>
    %c3 = arith.constant 3 : index
    %c0_18 = arith.constant 0 : index
    %c0_19 = arith.constant 0 : index
    %19 = vector.load %arg3[%c3, %c0_18, %c0_19] : memref<9x8x8xbf16, #tpu.memory_space<vmem>>, vector<1x8x8xbf16>
    %20 = vector.shape_cast %19 : vector<1x8x8xbf16> to vector<8x8xbf16>
    %c0_20 = arith.constant 0 : index
    %c0_21 = arith.constant 0 : index
    %c34 = arith.constant 34 : index
    %21 = vector.load %arg2[%c0_20, %c0_21, %c34] : memref<1x8x512xbf16, #tpu.memory_space<vmem>>, vector<1x8x384xbf16>
    %22 = vector.shape_cast %21 : vector<1x8x384xbf16> to vector<8x384xbf16>
    %cst_22 = arith.constant dense<0.000000e+00> : vector<8x384xf32>
    %23 = tpu.matmul %20, %22, %cst_22 {dimension_numbers = #tpu.dot_dimension_numbers<[1], [0], [0], [1], [0, 0, 1, 1], [], []>} : vector<8x8xbf16>, vector<8x384xbf16>, vector<8x384xf32> -> vector<8x384xf32>
    %24 = arith.addf %18, %23 : vector<8x384xf32>
    %c4 = arith.constant 4 : index
    %c0_23 = arith.constant 0 : index
    %c0_24 = arith.constant 0 : index
    %25 = vector.load %arg3[%c4, %c0_23, %c0_24] : memref<9x8x8xbf16, #tpu.memory_space<vmem>>, vector<1x8x8xbf16>
    %26 = vector.shape_cast %25 : vector<1x8x8xbf16> to vector<8x8xbf16>
    %c0_25 = arith.constant 0 : index
    %c0_26 = arith.constant 0 : index
    %c35 = arith.constant 35 : index
    %27 = vector.load %arg2[%c0_25, %c0_26, %c35] : memref<1x8x512xbf16, #tpu.memory_space<vmem>>, vector<1x8x384xbf16>
    %28 = vector.shape_cast %27 : vector<1x8x384xbf16> to vector<8x384xbf16>
    %cst_27 = arith.constant dense<0.000000e+00> : vector<8x384xf32>
    %29 = tpu.matmul %26, %28, %cst_27 {dimension_numbers = #tpu.dot_dimension_numbers<[1], [0], [0], [1], [0, 0, 1, 1], [], []>} : vector<8x8xbf16>, vector<8x384xbf16>, vector<8x384xf32> -> vector<8x384xf32>
    %30 = arith.addf %24, %29 : vector<8x384xf32>
    %c5 = arith.constant 5 : index
    %c0_28 = arith.constant 0 : index
    %c0_29 = arith.constant 0 : index
    %31 = vector.load %arg3[%c5, %c0_28, %c0_29] : memref<9x8x8xbf16, #tpu.memory_space<vmem>>, vector<1x8x8xbf16>
    %32 = vector.shape_cast %31 : vector<1x8x8xbf16> to vector<8x8xbf16>
    %c0_30 = arith.constant 0 : index
    %c0_31 = arith.constant 0 : index
    %c36 = arith.constant 36 : index
    %33 = vector.load %arg2[%c0_30, %c0_31, %c36] : memref<1x8x512xbf16, #tpu.memory_space<vmem>>, vector<1x8x384xbf16>
    %34 = vector.shape_cast %33 : vector<1x8x384xbf16> to vector<8x384xbf16>
    %cst_32 = arith.constant dense<0.000000e+00> : vector<8x384xf32>
    %35 = tpu.matmul %32, %34, %cst_32 {dimension_numbers = #tpu.dot_dimension_numbers<[1], [0], [0], [1], [0, 0, 1, 1], [], []>} : vector<8x8xbf16>, vector<8x384xbf16>, vector<8x384xf32> -> vector<8x384xf32>
    %36 = arith.addf %30, %35 : vector<8x384xf32>
    %c6 = arith.constant 6 : index
    %c0_33 = arith.constant 0 : index
    %c0_34 = arith.constant 0 : index
    %37 = vector.load %arg3[%c6, %c0_33, %c0_34] : memref<9x8x8xbf16, #tpu.memory_space<vmem>>, vector<1x8x8xbf16>
    %38 = vector.shape_cast %37 : vector<1x8x8xbf16> to vector<8x8xbf16>
    %c0_35 = arith.constant 0 : index
    %c0_36 = arith.constant 0 : index
    %c68 = arith.constant 68 : index
    %39 = vector.load %arg2[%c0_35, %c0_36, %c68] : memref<1x8x512xbf16, #tpu.memory_space<vmem>>, vector<1x8x384xbf16>
    %40 = vector.shape_cast %39 : vector<1x8x384xbf16> to vector<8x384xbf16>
    %cst_37 = arith.constant dense<0.000000e+00> : vector<8x384xf32>
    %41 = tpu.matmul %38, %40, %cst_37 {dimension_numbers = #tpu.dot_dimension_numbers<[1], [0], [0], [1], [0, 0, 1, 1], [], []>} : vector<8x8xbf16>, vector<8x384xbf16>, vector<8x384xf32> -> vector<8x384xf32>
    %42 = arith.addf %36, %41 : vector<8x384xf32>
    %c7 = arith.constant 7 : index
    %c0_38 = arith.constant 0 : index
    %c0_39 = arith.constant 0 : index
    %43 = vector.load %arg3[%c7, %c0_38, %c0_39] : memref<9x8x8xbf16, #tpu.memory_space<vmem>>, vector<1x8x8xbf16>
    %44 = vector.shape_cast %43 : vector<1x8x8xbf16> to vector<8x8xbf16>
    %c0_40 = arith.constant 0 : index
    %c0_41 = arith.constant 0 : index
    %c69 = arith.constant 69 : index
    %45 = vector.load %arg2[%c0_40, %c0_41, %c69] : memref<1x8x512xbf16, #tpu.memory_space<vmem>>, vector<1x8x384xbf16>
    %46 = vector.shape_cast %45 : vector<1x8x384xbf16> to vector<8x384xbf16>
    %cst_42 = arith.constant dense<0.000000e+00> : vector<8x384xf32>
    %47 = tpu.matmul %44, %46, %cst_42 {dimension_numbers = #tpu.dot_dimension_numbers<[1], [0], [0], [1], [0, 0, 1, 1], [], []>} : vector<8x8xbf16>, vector<8x384xbf16>, vector<8x384xf32> -> vector<8x384xf32>
    %48 = arith.addf %42, %47 : vector<8x384xf32>
    %c8 = arith.constant 8 : index
    %c0_43 = arith.constant 0 : index
    %c0_44 = arith.constant 0 : index
    %49 = vector.load %arg3[%c8, %c0_43, %c0_44] : memref<9x8x8xbf16, #tpu.memory_space<vmem>>, vector<1x8x8xbf16>
    %50 = vector.shape_cast %49 : vector<1x8x8xbf16> to vector<8x8xbf16>
    %c0_45 = arith.constant 0 : index
    %c0_46 = arith.constant 0 : index
    %c70 = arith.constant 70 : index
    %51 = vector.load %arg2[%c0_45, %c0_46, %c70] : memref<1x8x512xbf16, #tpu.memory_space<vmem>>, vector<1x8x384xbf16>
    %52 = vector.shape_cast %51 : vector<1x8x384xbf16> to vector<8x384xbf16>
    %cst_47 = arith.constant dense<0.000000e+00> : vector<8x384xf32>
    %53 = tpu.matmul %50, %52, %cst_47 {dimension_numbers = #tpu.dot_dimension_numbers<[1], [0], [0], [1], [0, 0, 1, 1], [], []>} : vector<8x8xbf16>, vector<8x384xbf16>, vector<8x384xf32> -> vector<8x384xf32>
    %54 = arith.addf %48, %53 : vector<8x384xf32>
    %c0_48 = arith.constant 0 : index
    %c0_49 = arith.constant 0 : index
    %55 = vector.load %arg4[%c0_48, %c0_49] : memref<8x1xf32, #tpu.memory_space<vmem>>, vector<8x1xf32>
    %56 = vector.broadcast %55 : vector<8x1xf32> to vector<8x384xf32>
    %57 = arith.addf %54, %56 : vector<8x384xf32>
    %c0_50 = arith.constant 0 : index
    %c0_51 = arith.constant 0 : index
    %c0_52 = arith.constant 0 : index
    %58 = vector.load %arg5[%c0_50, %c0_51, %c0_52] : memref<1x8x384xf32, #tpu.memory_space<vmem>>, vector<1x8x384xf32>
    %59 = vector.shape_cast %58 : vector<1x8x384xf32> to vector<8x384xf32>
    %60 = vector.shape_cast %57 : vector<8x384xf32> to vector<1x8x384xf32>
    tpu.vector_store %arg5[%c0_50, %c0_51, %c0_52], %60 {strides = array<i32>} : memref<1x8x384xf32, #tpu.memory_space<vmem>>, vector<1x8x384xf32>,
    return
  }
  func.func @transform_0(%arg0: i32, %arg1: i32) -> (i32, i32, i32) {
    %c0_i32 = arith.constant 0 : i32
    %c0_i32_0 = arith.constant 0 : i32
    return %arg0, %c0_i32, %arg1 : i32, i32, i32
  }
  func.func @transform_1(%arg0: i32, %arg1: i32) -> (i32, i32, i32) {
    %c0_i32 = arith.constant 0 : i32
    %c0_i32_0 = arith.constant 0 : i32
    %c0_i32_1 = arith.constant 0 : i32
    %c0_i32_2 = arith.constant 0 : i32
    return %c0_i32, %c0_i32_0, %c0_i32_1 : i32, i32, i32
  }
  func.func @transform_2(%arg0: i32, %arg1: i32) -> (i32, i32) {
    %c0_i32 = arith.constant 0 : i32
    %c0_i32_0 = arith.constant 0 : i32
    %c0_i32_1 = arith.constant 0 : i32
    return %c0_i32, %c0_i32_0 : i32, i32
  }
  func.func @transform_3(%arg0: i32, %arg1: i32) -> (i32, i32, i32) {
    %c0_i32 = arith.constant 0 : i32
    %c0_i32_0 = arith.constant 0 : i32
    return %arg0, %c0_i32, %arg1 : i32, i32, i32
  }
}

</mosaic_0001>

<bundles_post_ra>
// kernel: tpu_custom_call.1
= control target key start
LH: loop header
LB: loop body
LE: loop exit
PB: predicated region body
PF: predicated region fallthrough
CT: control target
= control target key end

     0   :  { %8 = vsyncpa [#allocation3], 0  ;;  %s1493_s0 = inlined_call_operand.hbm [shape: bf16[2,8,1536], index: 0, kind: input, shape index: {}]   ;;  %s1494_s1 = inlined_call_operand.vmem [shape: bf16[9,8,8], index: 1, kind: input, shape index: {}]   ;;  %s1495_s2 = inlined_call_operand.vmem [shape: f32[8,1], index: 2, kind: input, shape index: {}]   ;;  %s1496_s3 = inlined_call_operand.hbm [shape: f32[2,8,1152], index: 3, kind: output, shape index: {}]  }
   0x1   :  { %10 = vsyncpa [#allocation3 + $0x1], 0 }
   0x2   :  { %11 = vsyncpa [#allocation4], 0 }
   0x3   :  { %13 = vsyncpa [#allocation4 + $0x1], 0  ;;  %s1243_s12 = smov 0   ;;  %s1245_s13 = smov 0  }
   0x4   :  { %s1247_s14 = smov 0   ;;  %s1249_s15 = smov 0  }
   0x5   :  { %s1251_s16 = smov 0   ;;  %s1253_s17 = smov 0  }
   0x6   :  { %s1255_s18 = smov 0   ;;  %s1257_s19 = smov 0  }
   0x7 LB: > { %s945_s20 = sadd.s32 4294967295, %s1212_s19   ;;  %s946_s21 = sadd.s32 4294967294, %s1212_s19   ;;  %s1212_s19 = sphi %s1257_s19, %s19_s19   ;;  %s1208_s18 = sphi %s1255_s18, %s1510_s18   ;;  %s1204_s17 = sphi %s1253_s17, %s1509_s17   ;;  %s1200_s16 = sphi %s1251_s16, %s1508_s16   ;;  %s1196_s15 = sphi %s1249_s15, %s1507_s15   ;;  %s1192_s14 = sphi %s1247_s14, %s1506_s14   ;;  %s1188_s13 = sphi %s1245_s13, %s1505_s13   ;;  %s1184_s12 = sphi %s1243_s12, %s1504_s12  }
   0x8   : > { %s28_s22 = sadd.s32 1, %s1204_s17  ;;  %s31_s23 = sadd.s32 1, %s1208_s18 }
   0x9   : > { %p29_p0 = scmp.ge.s32.totalorder %s28_s22, 3  ;;  %s40_s24 = sadd.s32 1, %s1192_s14 }
   0xa   : > { %p47_p1 = scmp.ne.s32.totalorder %s1192_s14, %s1188_s13  ;;  %p48_p2 = scmp.eq.s32.totalorder %s1212_s19, 0 }
   0xb   : > { %s1512_s22 = smov (%p29_p0, %s28_s22), 0  ;;  %s1514_s23 = smov (!%p29_p0, %s31_s23), %s1208_s18 }
   0xc   : > { %s36_s25 = ssub.s32 %s1204_s17, %s1512_s22  ;;  %p1296_p3 = por %p48_p2, %p47_p1 }
   0xd   : > { %p33_p4 = scmp.ge.s32.totalorder %s1514_s23, 2  ;;  %p53_p5 = scmp.ne.s32.totalorder %s1188_s13, %s1184_s12 }
   0xe   : > { %p54_p6 = scmp.eq.s32.totalorder %s945_s20, 0  ;;  %p121_p7 = scmp.eq.s32.totalorder %s945_s20, 5 }
   0xf   : > { %s1516_s23 = smov (%p33_p4, %s1514_s23), 0  ;;  %p127_p10 = scmp.eq.s32.totalorder %s946_s21, 5 }
  0x10   : > { %1499 = sst [smem:[#allocation8_spill]] %s1516_s23  ;;  %p1304_p8 = por %p54_p6, %p53_p5 }
  0x11   : > { %p1308_p9 = por %p121_p7, %p47_p1  ;;  %s35_s29 = ssub.s32 %s1208_s18, %s1516_s23 }
  0x12   : > { %s37_s30 = sor.u32 %s36_s25, %s35_s29  ;;  %p1314_p12 = por %p127_p10, %p53_p5 }
  0x13   : > { %p38_p11 = scmp.eq.s32.totalorder %s37_s30, 0  ;;  %p1007_p13 = scmp.lt.s32.totalorder %s1212_s19, 6 }
  0x14   : > { %s153_s5 = sand.u32 1, %s1192_s14   ;;  %s950_s8 = sshll.u32 %s1204_s17, 2 }
  0x15   : > { %s1321_s6 = scalar_select %p38_p11, %s1192_s14, %s40_s24  }
  0x16   : > { %s949_s7 = sshll.u32 %s153_s5, 4  ;;  %s992_s9 = smul.u32 12, %s1208_s18 }
  0x17   : > { %s157_s10 = scalar_lea.vmem [#allocation2], %s949_s7  ;;  %p1000_p0 = pnand %p1007_p13, %p1296_p3 }
  0x18   : > { %s168_s11 = sshll.u32 %s157_s10, 4  ;;  %s162_s20 = sadd.s32 %s992_s9, %s950_s8  ;;  %s169_s11 = int_to_ptr.vmem [resolvable:$true] %s168_s11 }
  0x19   : > { %p952_p1 = scmp.ge.s32.totalorder %s1212_s19, 1  ;;  %s951_s21 = sshll.u32 %s162_s20, 2 }
  0x1a   : > { %s164_s30 = scalar_lea.hbm %s1493_s0, %s951_s21  ;;  %p173_p2 = scmp.lt.s32.totalorder %s1212_s19, 7 }
  0x1b   : > { %s166_s23 = sshll.u32 %s164_s30, 4  ;;  %s154_s24 = scalar_lea.sflag [#allocation3], %s153_s5  ;;  %s167_s23 = int_to_ptr.hbm [resolvable:$true] %s166_s23 }
  0x1c   : > { %p174_p4 = pnand %p952_p1, %p173_p2 }
  0x1d   : > { %1002 = dma.hbm_to_vmem [thread:$0]  (!%p1000_p0), %s167_s23, 256, %s169_s11, %s154_s24  }
  0x1e   : > { %177 = sbr.rel (%p174_p4) target bundleno = 408 (0x198), region = 32  ;;  %s1333_s7 = sand.u32 (!%p174_p4), 1, %s1188_s13  }
  0x1f   : > { %s953_s26 = sshll.u32 (!%p174_p4), %s1333_s7, 4  ;;  %s180_s8 = scalar_lea.sflag (!%p174_p4), [#allocation3], %s1333_s7 }
  0x20   : > { %s1337_s9 = scalar_lea.vmem (!%p174_p4), [#allocation2], %s953_s26 }
  0x23   : > { %1175 = dma.done.wait (%p1304_p8), %s180_s8, 256  }
  0x24   : > { %1177 = vsyncadd (%p1304_p8), %s180_s8, 4294967040  ;;  %v216_v0 = vld [vmem:[%s1337_s9 + $0x8] sm:$0xff]  ;;  %v215_v1 = vld [vmem:[%s1337_s9] sm:$0xff]  ;;  %s1214_s23 = smov 127   ;;  %s1215_s5 = smov 126   ;;  %vm243_vm0 = vcmask 1043456  }
  0x25   : > { %v221_v2 = vunpack.c.l.b16 %v216_v0  ;;  %v219_v3 = vunpack.c.l.b16 %v215_v1  ;;  %v222_v6 = vunpack.c.h.b16 %v216_v0  ;;  %v220_v7 = vunpack.c.h.b16 %v215_v1  ;;  %s1216_s27 = smov 94   ;;  %s1217_s10 = smov 93   ;;  %v210_v11 = vld [vmem:[%s1494_s1] sm:$0xf]  ;;  %v212_v15 = vld [vmem:[%s1337_s9 + $0x8] sm:$0xf] }
  0x26   : > { %s1218_s11 = smov 92   ;;  %s1219_s20 = smov 60   ;;  %vm239_vm1 = vcmask 64512   ;;  %vm361_vm2 = vcmask 1031168   ;;  %v296_v18 = vunpack.c.l.b16 %v212_v15  ;;  %vm235_vm3 = vcmask 1039360  }
  0x27   : > { %v225_v4 = vpack.c.b16 %v221_v2, %v221_v2  ;;  %v223_v5 = vpack.c.b16 %v219_v3, %v219_v3  ;;  %v226_v8 = vpack.c.b16 %v222_v6, %v222_v6  ;;  %v224_v9 = vpack.c.b16 %v220_v7, %v220_v7  ;;  %s1220_s21 = smov 59   ;;  %s1221_s25 = smov 58   ;;  %v954_v33 = vld [vmem:[%s1494_s1 + $0x4] sm:$0xf]  ;;  %v961_v43 = vld [vmem:[%s1494_s1 + $0x8] sm:$0xf] }
  0x28   : > { %v299_v21 = vpack.c.b16 %v296_v18, %v296_v18  ;;  %vm429_vm4 = vcmask 769024   ;;  %vm497_vm5 = vcmask 760832   ;;  %v965_v56 = vld [vmem:[%s1494_s1 + $0xc] sm:$0xf]  ;;  %vm565_vm6 = vcmask 752640   ;;  %s840_s30 = scalar_lea.sflag [#allocation4], %s1333_s7 }
  0x29   : > { %231 = vrot.lane.b32.xlu0 %v225_v4, %s1214_s23  ;;  %227 = vrot.lane.b32.xlu1 %v223_v5, %s1214_s23  ;;  %v304_v10 = vsel %vm243_vm0, %v223_v5, 0  ;;  %v307_v28 = vsel %vm243_vm0, %v224_v9, 0  ;;  %vm633_vm7 = vcmask 490496   ;;  %vm701_vm8 = vcmask 482304  }
  0x2a   : > { %353 = vrot.lane.b32.xlu2 %v223_v5, %s1215_s5  ;;  %319 = vmatpush.bf16.msra.mxu3 %v304_v10  ;;  %v310_v32 = vsel %vm243_vm0, %v299_v21, 0  ;;  %vm769_vm9 = vcmask 474112  }
  0x2d   : > { %958 = vmatmul.msk.bf16.vlgmr.msra.gmra.mxu3 %vm239_vm1, %v210_v11 }
  0x31   : > { %233 = vrot.lane.b32.xlu0 %v226_v8, %s1214_s23  ;;  %229 = vrot.lane.b32.xlu1 %v224_v9, %s1214_s23  ;;  %s847_s23 = smul.u32 3, %s1196_s15 }
  0x32   : > { %355 = vrot.lane.b32.xlu2 %v224_v9, %s1215_s5 }
  0x39   : > { %357 = vrot.lane.b32.xlu0 %v225_v4, %s1215_s5  ;;  %423 = vrot.lane.b32.xlu1 %v224_v9, %s1216_s27 }
  0x3a   : > { %425 = vrot.lane.b32.xlu2 %v225_v4, %s1216_s27 }
  0x41   : > { %359 = vrot.lane.b32.xlu0 %v226_v8, %s1215_s5  ;;  %421 = vrot.lane.b32.xlu1 %v223_v5, %s1216_s27  ;;  %s994_s5 = smul.u32 9, %s1200_s16 }
  0x42   : > { %427 = vrot.lane.b32.xlu2 %v226_v8, %s1216_s27  ;;  %s993_s27 = smul.u32 24, %s1333_s7 }
  0x49   : > { %493 = vrot.lane.b32.xlu0 %v225_v4, %s1217_s10  ;;  %495 = vrot.lane.b32.xlu1 %v226_v8, %s1217_s10 }
  0x4a   : > { %489 = vrot.lane.b32.xlu2 %v223_v5, %s1217_s10 }
  0x51   : > { %491 = vrot.lane.b32.xlu0 %v224_v9, %s1217_s10  ;;  %557 = vrot.lane.b32.xlu1 %v223_v5, %s1218_s11  ;;  %s851_s10 = sadd.s32 %s994_s5, %s847_s23  ;;  %s1134_s23 = scalar_lea.hbm %s1496_s3, 144 }
  0x52   : > { %559 = vrot.lane.b32.xlu2 %v224_v9, %s1218_s11 }
  0x59   : > { %625 = vrot.lane.b32.xlu0 %v223_v5, %s1219_s20  ;;  %627 = vrot.lane.b32.xlu1 %v224_v9, %s1219_s20 }
  0x5a   : > { %561 = vrot.lane.b32.xlu2 %v225_v4, %s1218_s11 }
  0x61   : > { %563 = vrot.lane.b32.xlu0 %v226_v8, %s1218_s11  ;;  %629 = vrot.lane.b32.xlu1 %v225_v4, %s1219_s20  ;;  %s989_s11 = sshll.u32 %s851_s10, 3 }
  0x62   : > { %695 = vrot.lane.b32.xlu2 %v224_v9, %s1220_s21 }
  0x69   : > { %697 = vrot.lane.b32.xlu0 %v225_v4, %s1220_s21  ;;  %631 = vrot.lane.b32.xlu1 %v226_v8, %s1219_s20  ;;  %s853_s20 = scalar_lea.hbm %s1496_s3, %s989_s11 }
  0x6a   : > { %693 = vrot.lane.b32.xlu2 %v223_v5, %s1220_s21  ;;  %s857_s29 = sshll.u32 %s853_s20, 4  ;;  %s858_s29 = int_to_ptr.hbm [resolvable:$true] %s857_s29 }
  0x6b   : > { %s1128_s24 = sshra.s32 %s858_s29, 4  ;;  %s1129_s24 = int_to_ptr.hbm [resolvable:$true] %s1128_s24 }
  0x6c   : > { %s1130_s26 = scalar_lea.hbm %s1129_s24, 24  ;;  %p1135_p7 = scmp.lt.s32.totalorder %s1129_s24, %s1496_s3 }
  0x6d   : > { %p1131_p3 = scmp.ne.s32.totalorder %s1129_s24, %s1130_s26  ;;  %p1136_p8 = scmp.lt.s32.totalorder %s1134_s23, %s1130_s26 }
  0x6f   : > { %p1132_p5 = pnand %p1131_p3, %p1308_p9  ;;  %p1137_p10 = por %p1136_p8, %p1135_p7 }
  0x71   : > { %699 = vrot.lane.b32.xlu0 %v226_v8, %s1220_s21  ;;  %765 = vrot.lane.b32.xlu1 %v225_v4, %s1221_s25  ;;  %s206_s21 = scalar_lea.vmem [#allocation5], %s993_s27  ;;  %p1133_p6 = pneg %p1132_p5 }
  0x72   : > { %767 = vrot.lane.b32.xlu2 %v226_v8, %s1221_s25  ;;  %v973_v8 = vld [vmem:[%s1494_s1 + $0x14] sm:$0xf] }
  0x73   : > { %p1138_p11 = pnand %p1137_p10, %p1133_p6 }
  0x79   : > { %763 = vrot.lane.b32.xlu1 %v224_v9, %s1221_s25  ;;  %761 = vrot.lane.b32.xlu0 %v223_v5, %s1221_s25  ;;  %s855_s25 = sshll.u32 %s206_s21, 4  ;;  %s856_s25 = int_to_ptr.vmem [resolvable:$true] %s855_s25 }
  0x84   : > { %v354_v12 = vpop.permute.xlu2 %353 }
  0x8c   : > { %v356_v13 = vpop.permute.xlu2 %355 }
  0x8d   : > { %v362_v19 = vsel %vm361_vm2, %v354_v12, %v356_v13 }
  0x8e   : > { %v369_v24 = vsel %vm243_vm0, %v362_v19, 0 }
  0x94   : > { %v426_v14 = vpop.permute.xlu2 %425 }
  0x9b   : > { %v232_v16 = vpop.permute.xlu0 %231  ;;  %v228_v17 = vpop.permute.xlu1 %227 }
  0x9c   : > { %v428_v20 = vpop.permute.xlu2 %427 }
  0x9d   : > { %v432_v34 = vsel %vm429_vm4, %v426_v14, %v428_v20 }
  0x9e   : > { %v443_v40 = vsel %vm243_vm0, %v432_v34, 0 }
  0xa3   : > { %v234_v22 = vpop.permute.xlu0 %233  ;;  %v230_v23 = vpop.permute.xlu1 %229 }
  0xa4   : > { %v236_v25 = vsel %vm235_vm3, %v228_v17, %v230_v23  ;;  %v237_v26 = vsel %vm235_vm3, %v230_v23, %v232_v16  ;;  %v238_v27 = vsel %vm235_vm3, %v232_v16, %v234_v22  ;;  %v490_v35 = vpop.permute.xlu2 %489  ;;  %v969_v17 = vld [vmem:[%s1494_s1 + $0x10] sm:$0xf] }
  0xa5   : > { %v245_v29 = vsel %vm243_vm0, %v236_v25, 0  ;;  %v248_v30 = vsel %vm243_vm0, %v237_v26, 0  ;;  %v251_v31 = vsel %vm243_vm0, %v238_v27, 0  ;;  %v977_v25 = vld [vmem:[%s1494_s1 + $0x18] sm:$0xf] }
  0xa6   : > { %260 = vmatpush.bf16.msra.mxu0 %v245_v29  ;;  %273 = vmatpush.bf16.msra.mxu1 %v248_v30 }
  0xa7   : > { %286 = vmatpush.bf16.msra.mxu2 %v251_v31 }
  0xa9   : > { %955 = vmatmul.msk.bf16.vlgmr.msra.gmra.mxu0 %vm239_vm1, %v954_v33  ;;  %956 = vmatmul.msk.bf16.vlgmr.msra.gmra.mxu1 %vm239_vm1, %v954_v33 }
  0xaa   : > { %332 = vmatpush.bf16.msrb.mxu0 %v307_v28  ;;  %345 = vmatpush.bf16.msrb.mxu1 %v310_v32 }
  0xab   : > { %384 = vmatpush.bf16.msrb.mxu2 %v369_v24  ;;  %v358_v36 = vpop.permute.xlu0 %357  ;;  %v424_v37 = vpop.permute.xlu1 %423 }
  0xac   : > { %957 = vmatmul.msk.bf16.vlgmr.msra.gmra.mxu2 %vm239_vm1, %v954_v33  ;;  %v431_v38 = vsel %vm429_vm4, %v424_v37, %v426_v14  ;;  %v363_v39 = vsel %vm361_vm2, %v356_v13, %v358_v36  ;;  %v560_v50 = vpop.permute.xlu2 %559 }
  0xad   : > { %v440_v41 = vsel %vm243_vm0, %v431_v38, 0  ;;  %v372_v42 = vsel %vm243_vm0, %v363_v39, 0  ;;  %v981_v39 = vld [vmem:[%s1494_s1 + $0x1c] sm:$0xf] }
  0xae   : > { %397 = vmatpush.bf16.msrb.mxu3 %v372_v42  ;;  %v827_v42 = vld [vmem:[%s1495_s2] sm:$0xff] }
  0xaf   : > { %465 = vmatpush.bf16.msra.mxu2 %v440_v41 }
  0xb0   : > { %v321_v41 = vpop.f32.mrf.mxu3 }
  0xb1   : > { %963 = vmatmul.msk.bf16.vlgmr.msrb.gmra.mxu3 %vm239_vm1, %v961_v43 }
  0xb2   : > { %478 = vmatpush.bf16.msra.mxu3 %v443_v40  ;;  %v985_v40 = vld [vmem:[%s1494_s1 + $0x20] sm:$0xf] }
  0xb3   : > { %v360_v44 = vpop.permute.xlu0 %359  ;;  %v422_v45 = vpop.permute.xlu1 %421 }
  0xb4   : > { %v364_v46 = vsel %vm361_vm2, %v358_v36, %v360_v44  ;;  %v430_v47 = vsel %vm429_vm4, %v422_v45, %v424_v37  ;;  %v562_v55 = vpop.permute.xlu2 %561 }
  0xb5   : > { %v375_v48 = vsel %vm243_vm0, %v364_v46, 0  ;;  %v437_v49 = vsel %vm243_vm0, %v430_v47, 0  ;;  %v567_v62 = vsel %vm565_vm6, %v560_v50, %v562_v55 }
  0xb6   : > { %410 = vmatpush.bf16.msra.mxu0 %v375_v48  ;;  %452 = vmatpush.bf16.msra.mxu1 %v437_v49  ;;  %v576_v2 = vsel %vm243_vm0, %v567_v62, 0 }
  0xb8   : > { %v323_v44 = vpop.f32.mrf.mxu3 }
  0xb9   : > { %959 = vmatmul.msk.bf16.vlgmr.msrb.gmra.mxu0 %vm239_vm1, %v210_v11  ;;  %960 = vmatmul.msk.bf16.vlgmr.msrb.gmra.mxu1 %vm239_vm1, %v210_v11 }
  0xbb   : > { %v494_v51 = vpop.permute.xlu0 %493  ;;  %v496_v52 = vpop.permute.xlu1 %495 }
  0xbc   : > { %962 = vmatmul.msk.bf16.vlgmr.msrb.gmra.mxu2 %vm239_vm1, %v961_v43  ;;  %v500_v53 = vsel %vm497_vm5, %v494_v51, %v496_v52  ;;  %v696_v3 = vpop.permute.xlu2 %695 }
  0xbd   : > { %v511_v54 = vsel %vm243_vm0, %v500_v53, 0 }
  0xbe   : > { %546 = vmatpush.bf16.msrb.mxu2 %v511_v54 }
  0xc1   : > { %968 = vmatmul.msk.bf16.vlgmr.msra.gmra.mxu3 %vm239_vm1, %v965_v56 }
  0xc3   : > { %v492_v57 = vpop.permute.xlu0 %491  ;;  %v558_v58 = vpop.permute.xlu1 %557 }
  0xc4   : > { %v499_v59 = vsel %vm497_vm5, %v492_v57, %v494_v51  ;;  %v498_v60 = vsel %vm497_vm5, %v490_v35, %v492_v57  ;;  %v566_v61 = vsel %vm565_vm6, %v558_v58, %v560_v50  ;;  %v694_v9 = vpop.permute.xlu2 %693 }
  0xc5   : > { %v508_v63 = vsel %vm243_vm0, %v499_v59, 0  ;;  %v505_v0 = vsel %vm243_vm0, %v498_v60, 0  ;;  %v573_v1 = vsel %vm243_vm0, %v566_v61, 0  ;;  %v702_v14 = vsel %vm701_vm8, %v694_v9, %v696_v3 }
  0xc6   : > { %533 = vmatpush.bf16.msrb.mxu1 %v508_v63  ;;  %520 = vmatpush.bf16.msrb.mxu0 %v505_v0  ;;  %v709_v18 = vsel %vm243_vm0, %v702_v14, 0 }
  0xc7   : > { %588 = vmatpush.bf16.msrb.mxu3 %v573_v1 }
  0xc9   : > { %964 = vmatmul.msk.bf16.vlgmr.msra.gmra.mxu0 %vm239_vm1, %v961_v43  ;;  %966 = vmatmul.msk.bf16.vlgmr.msra.gmra.mxu1 %vm239_vm1, %v965_v56  ;;  %v1222_v43 = vmov 0  }
  0xca   : > { %601 = vmatpush.bf16.msra.mxu0 %v576_v2  ;;  %1082 = vset.pattern.permute.xlu2 %v1222_v43 }
  0xcb   : > { %v626_v4 = vpop.permute.xlu0 %625  ;;  %v628_v5 = vpop.permute.xlu1 %627  ;;  %1083 = vset.pattern.permute.xlu0 %v1222_v43  ;;  %830 = vperm.xlu2 %1082, %v827_v42  }
  0xcc   : > { %967 = vmatmul.msk.bf16.vlgmr.msra.gmra.mxu2 %vm239_vm1, %v965_v56  ;;  %v634_v6 = vsel %vm633_vm7, %v626_v4, %v628_v5  ;;  %v768_v26 = vpop.permute.xlu2 %767 }
  0xcd   : > { %v641_v7 = vsel %vm243_vm0, %v634_v6, 0 }
  0xce   : > { %656 = vmatpush.bf16.msra.mxu2 %v641_v7 }
  0xd1   : > { %974 = vmatmul.msk.bf16.vlgmr.msrb.gmra.mxu3 %vm239_vm1, %v973_v8 }
  0xd3   : > { %v564_v10 = vpop.permute.xlu0 %563  ;;  %v630_v11 = vpop.permute.xlu1 %629 }
  0xd4   : > { %v568_v12 = vsel %vm565_vm6, %v562_v55, %v564_v10  ;;  %v635_v13 = vsel %vm633_vm7, %v628_v5, %v630_v11 }
  0xd5   : > { %v579_v15 = vsel %vm243_vm0, %v568_v12, 0  ;;  %v644_v16 = vsel %vm243_vm0, %v635_v13, 0 }
  0xd6   : > { %669 = vmatpush.bf16.msra.mxu3 %v644_v16  ;;  %614 = vmatpush.bf16.msra.mxu1 %v579_v15 }
  0xd9   : > { %970 = vmatmul.msk.bf16.vlgmr.msrb.gmra.mxu0 %vm239_vm1, %v969_v17  ;;  %971 = vmatmul.msk.bf16.vlgmr.msrb.gmra.mxu1 %vm239_vm1, %v969_v17 }
  0xda   : > { %724 = vmatpush.bf16.msrb.mxu1 %v709_v18 }
  0xdb   : > { %v698_v19 = vpop.permute.xlu0 %697  ;;  %v632_v20 = vpop.permute.xlu1 %631 }
  0xdc   : > { %972 = vmatmul.msk.bf16.vlgmr.msrb.gmra.mxu2 %vm239_vm1, %v969_v17  ;;  %v703_v21 = vsel %vm701_vm8, %v696_v3, %v698_v19  ;;  %v636_v22 = vsel %vm633_vm7, %v630_v11, %v632_v20 }
  0xdd   : > { %v712_v23 = vsel %vm243_vm0, %v703_v21, 0  ;;  %v647_v24 = vsel %vm243_vm0, %v636_v22, 0 }
  0xde   : > { %682 = vmatpush.bf16.msrb.mxu0 %v647_v24  ;;  %737 = vmatpush.bf16.msrb.mxu2 %v712_v23 }
  0xe1   : > { %979 = vmatmul.msk.bf16.vlgmr.msra.gmra.mxu3 %vm239_vm1, %v977_v25 }
  0xe3   : > { %v700_v27 = vpop.permute.xlu0 %699  ;;  %v766_v28 = vpop.permute.xlu1 %765 }
  0xe4   : > { %v704_v29 = vsel %vm701_vm8, %v698_v19, %v700_v27  ;;  %v772_v31 = vsel %vm769_vm9, %v766_v28, %v768_v26 }
  0xe5   : > { %v715_v30 = vsel %vm243_vm0, %v704_v29, 0  ;;  %v783_v32 = vsel %vm243_vm0, %v772_v31, 0 }
  0xe6   : > { %750 = vmatpush.bf16.msrb.mxu3 %v715_v30 }
  0xe9   : > { %975 = vmatmul.msk.bf16.vlgmr.msra.gmra.mxu0 %vm239_vm1, %v973_v8  ;;  %976 = vmatmul.msk.bf16.vlgmr.msra.gmra.mxu1 %vm239_vm1, %v973_v8 }
  0xeb   : > { %v764_v33 = vpop.permute.xlu1 %763  ;;  %v762_v34 = vpop.permute.xlu0 %761 }
  0xec   : > { %978 = vmatmul.msk.bf16.vlgmr.msra.gmra.mxu2 %vm239_vm1, %v977_v25  ;;  %v771_v35 = vsel %vm769_vm9, %v764_v33, %v766_v28  ;;  %v770_v36 = vsel %vm769_vm9, %v762_v34, %v764_v33 }
  0xed   : > { %818 = vmatpush.bf16.msra.mxu2 %v783_v32  ;;  %v780_v37 = vsel %vm243_vm0, %v771_v35, 0  ;;  %v777_v38 = vsel %vm243_vm0, %v770_v36, 0 }
  0xee   : > { %805 = vmatpush.bf16.msra.mxu1 %v780_v37  ;;  %792 = vmatpush.bf16.msra.mxu0 %v777_v38 }
  0xf1   : > { %984 = vmatmul.msk.bf16.vlgmr.msrb.gmra.mxu3 %vm239_vm1, %v981_v39 }
  0xf9   : > { %980 = vmatmul.msk.bf16.vlgmr.msrb.gmra.mxu0 %vm239_vm1, %v977_v25  ;;  %982 = vmatmul.msk.bf16.vlgmr.msrb.gmra.mxu1 %vm239_vm1, %v981_v39 }
  0xfc   : > { %983 = vmatmul.msk.bf16.vlgmr.msrb.gmra.mxu2 %vm239_vm1, %v981_v39 }
 0x109   : > { %986 = vmatmul.msk.bf16.vlgmr.msra.gmra.mxu0 %vm239_vm1, %v985_v40  ;;  %987 = vmatmul.msk.bf16.vlgmr.msra.gmra.mxu1 %vm239_vm1, %v985_v40 }
 0x10c   : > { %988 = vmatmul.msk.bf16.vlgmr.msra.gmra.mxu2 %vm239_vm1, %v985_v40 }
 0x126   : > { %v262_v45 = vpop.f32.mrf.mxu0  ;;  %v275_v46 = vpop.f32.mrf.mxu1 }
 0x127   : > { %v322_v47 = vadd.f32 %v321_v41, %v262_v45  ;;  %v831_v45 = vpop.permute.xlu2 %830 }
 0x12e   : > { %v264_v49 = vpop.f32.mrf.mxu0  ;;  %v277_v50 = vpop.f32.mrf.mxu1 }
 0x12f   : > { %v288_v48 = vpop.f32.mrf.mxu2 }
 0x134   : > { %v399_v51 = vpop.f32.mrf.mxu3 }
 0x136   : > { %v334_v53 = vpop.f32.mrf.mxu0  ;;  %v347_v54 = vpop.f32.mrf.mxu1 }
 0x137   : > { %v290_v52 = vpop.f32.mrf.mxu2  ;;  %v335_v55 = vadd.f32 %v334_v53, %v275_v46  ;;  %v348_v56 = vadd.f32 %v347_v54, %v288_v48 }
 0x139   : > { %v417_v57 = vadd.f32 %v399_v51, %v335_v55 }
 0x13c   : > { %v401_v58 = vpop.f32.mrf.mxu3 }
 0x13e   : > { %v336_v60 = vpop.f32.mrf.mxu0  ;;  %v349_v61 = vpop.f32.mrf.mxu1 }
 0x13f   : > { %v386_v59 = vpop.f32.mrf.mxu2 }
 0x140   : > { %v416_v26 = vadd.f32 %v386_v59, %v322_v47 }
 0x144   : > { %v480_v62 = vpop.f32.mrf.mxu3 }
 0x146   : > { %v412_v0 = vpop.f32.mrf.mxu0  ;;  %v454_v1 = vpop.f32.mrf.mxu1 }
 0x147   : > { %v388_v63 = vpop.f32.mrf.mxu2  ;;  %v484_v27 = vadd.f32 %v454_v1, %v416_v26  ;;  %v418_v33 = vadd.f32 %v412_v0, %v348_v56 }
 0x149   : > { %v486_v38 = vadd.f32 %v480_v62, %v418_v33 }
 0x14c   : > { %v482_v2 = vpop.f32.mrf.mxu3 }
 0x14e   : > { %v414_v4 = vpop.f32.mrf.mxu0  ;;  %v456_v5 = vpop.f32.mrf.mxu1 }
 0x14f   : > { %v467_v3 = vpop.f32.mrf.mxu2 }
 0x150   : > { %v485_v28 = vadd.f32 %v467_v3, %v417_v57 }
 0x154   : > { %v590_v6 = vpop.f32.mrf.mxu3 }
 0x156   : > { %v522_v8 = vpop.f32.mrf.mxu0  ;;  %v535_v9 = vpop.f32.mrf.mxu1 }
 0x157   : > { %v469_v7 = vpop.f32.mrf.mxu2  ;;  %v552_v30 = vadd.f32 %v522_v8, %v484_v27  ;;  %v553_v31 = vadd.f32 %v535_v9, %v485_v28 }
 0x159   : > { %v620_v37 = vadd.f32 %v590_v6, %v552_v30 }
 0x15c   : > { %v592_v10 = vpop.f32.mrf.mxu3 }
 0x15e   : > { %v524_v12 = vpop.f32.mrf.mxu0  ;;  %v537_v13 = vpop.f32.mrf.mxu1 }
 0x15f   : > { %v548_v11 = vpop.f32.mrf.mxu2 }
 0x160   : > { %v554_v41 = vadd.f32 %v548_v11, %v486_v38 }
 0x164   : > { %v671_v14 = vpop.f32.mrf.mxu3 }
 0x166   : > { %v603_v16 = vpop.f32.mrf.mxu0  ;;  %v616_v17 = vpop.f32.mrf.mxu1 }
 0x167   : > { %v550_v15 = vpop.f32.mrf.mxu2  ;;  %v621_v36 = vadd.f32 %v603_v16, %v553_v31  ;;  %v622_v46 = vadd.f32 %v616_v17, %v554_v41 }
 0x169   : > { %v689_v39 = vadd.f32 %v671_v14, %v621_v36 }
 0x16c   : > { %v673_v18 = vpop.f32.mrf.mxu3 }
 0x16e   : > { %v605_v20 = vpop.f32.mrf.mxu0  ;;  %v618_v21 = vpop.f32.mrf.mxu1 }
 0x16f   : > { %v658_v19 = vpop.f32.mrf.mxu2 }
 0x170   : > { %v688_v40 = vadd.f32 %v658_v19, %v620_v37 }
 0x174   : > { %v752_v22 = vpop.f32.mrf.mxu3 }
 0x176   : > { %v684_v24 = vpop.f32.mrf.mxu0  ;;  %v726_v25 = vpop.f32.mrf.mxu1 }
 0x177   : > { %v660_v23 = vpop.f32.mrf.mxu2  ;;  %v756_v42 = vadd.f32 %v726_v25, %v688_v40  ;;  %v690_v51 = vadd.f32 %v684_v24, %v622_v46 }
 0x179   : > { %v758_v54 = vadd.f32 %v752_v22, %v690_v51 }
 0x17c   : > { %v754_v29 = vpop.f32.mrf.mxu3 }
 0x17e   : > { %v686_v34 = vpop.f32.mrf.mxu0  ;;  %v728_v35 = vpop.f32.mrf.mxu1 }
 0x17f   : > { %v739_v32 = vpop.f32.mrf.mxu2 }
 0x180   : > { %v757_v43 = vadd.f32 %v739_v32, %v689_v39 }
 0x186   : > { %v794_v47 = vpop.f32.mrf.mxu0  ;;  %v807_v48 = vpop.f32.mrf.mxu1 }
 0x187   : > { %v741_v44 = vpop.f32.mrf.mxu2  ;;  %v824_v49 = vadd.f32 %v794_v47, %v756_v42  ;;  %v825_v50 = vadd.f32 %v807_v48, %v757_v43 }
 0x189   : > { %v833_v52 = vadd.f32 %v831_v45, %v824_v49  ;;  %v834_v53 = vadd.f32 %v831_v45, %v825_v50 }
 0x18b   : > { %836 = vst [vmem:[%s206_s21] sm:$0xff] %v833_v52 }
 0x18c   : > { %837 = vst [vmem:[%s206_s21 + $0x8] sm:$0xff] %v834_v53 }
 0x18e   : > { %v796_v57 = vpop.f32.mrf.mxu0  ;;  %v809_v58 = vpop.f32.mrf.mxu1 }
 0x18f   : > { %v820_v55 = vpop.f32.mrf.mxu2 }
 0x190   : > { %v826_v56 = vadd.f32 %v820_v55, %v758_v54 }
 0x192   : > { %v835_v59 = vadd.f32 %v831_v45, %v826_v56 }
 0x194   : > { %838 = vst [vmem:[%s206_s21 + $0x10] sm:$0xff] %v835_v59 }
 0x195   : > { %1141 = shalt.err (!%p1138_p11)
}
 0x196   : > { %997 = dma.vmem_to_hbm [thread:$0]  (%p1308_p9), %s856_s25, 384, %s858_s29, %s840_s30  }
 0x197   : > { %v822_v60 = vpop.f32.mrf.mxu2 }
 0x198 PF: > { %p1008_p13 = scmp.ge.s32.totalorder %s1212_s19, 2  ;;  %s869_s7 = sand.u32 1, %s1184_s12  }
 0x199   : > { %s870_s10 = scalar_lea.sflag [#allocation4], %s869_s7 }
 0x19a   : > { %p1004_p0 = pnand %p1008_p13, %p1314_p12 }
 0x19c   : > { %p1005_p1 = pneg %p1004_p0 }
 0x19e   : > { %1179 = dma.done.wait (%p1005_p1), %s870_s10, 384  }
 0x19f   : > { %1181 = vsyncadd (%p1005_p1), %s870_s10, 4294966912  ;;  %s19_s19 = sadd.s32 1, %s1212_s19   ;;  %s1503_s28 = sld [smem:[#allocation8_spill]] }
 0x1a0   : > { %p16_p2 = scmp.ge.s32.totalorder %s19_s19, 8   ;;  %s1504_s12 = smov %s1188_s13 }
 0x1a1   : > { %s1505_s13 = smov %s1192_s14  ;;  %s1506_s14 = smov %s1321_s6 }
 0x1a2   : > { %s1507_s15 = smov %s1204_s17  ;;  %s1508_s16 = smov %s1208_s18 }
 0x1a3   : > { %s1509_s17 = smov %s1512_s22  ;;  %18 = sbr.rel (!%p16_p2) target bundleno = 7 (0x7), region = 85 }
 0x1a5   : > { %s1510_s18 = smov %s1503_s28 }
 0x1a8   :  { %876 = vsyncpa [#allocation3], 1 }
 0x1a9   :  { %878 = vsyncpa [#allocation3 + $0x1], 1 }
 0x1aa   :  { %879 = vsyncpa [#allocation4], 1 }
 0x1ab   :  { %881 = vsyncpa [#allocation4 + $0x1], 1 }

</bundles_post_ra>
